<compile_context>
chip_gen: v6e
topology: v6e:2x2x1
jax: 0.10.0
libtpu: 0.0.40
codegen_flags: <defaults>
</compile_context>

<pallas_src>
import jax
import jax.numpy as jnp
from jax.experimental import pallas as pl
from jax.experimental.pallas import tpu as pltpu


def _round_up(x: int, n: int) -> int:
    return (x + n - 1) // n * n


def highway_kernel(x_ref, w_ref, b_ref, o_ref):
    x_bf = x_ref[...]                              # (tile_m, D) bf16
    d = x_bf.shape[-1]                             # 224
    d_half = w_ref.shape[-1] // 2                  # 256: lane-aligned h/t split
    # Single fused MXU matmul: (tile_m, D) @ (D, 2*D_pad), bf16 operands, f32 acc.
    hw = jnp.dot(x_bf, w_ref[...], preferred_element_type=jnp.float32)
    hw = hw + b_ref[...]                           # broadcast (1, 2*D_pad), f32
    h = hw[:, :d]                                  # x @ Wh + bh
    t = jax.nn.sigmoid(hw[:, d_half:d_half + d])   # sigmoid(x @ Wt + bt), EUP in f32
    x = x_bf.astype(jnp.float32)
    o_ref[...] = x + t * (jnp.maximum(h, 0.0) - x)


def _choose_tile_m(m: int) -> int:
    """Row tile: multiple of 8, <= ~1024 rows, and >= 2 balanced tiles when M allows."""
    tile_max = 1024
    if m <= 8:
        return 8
    n_tiles = max(2, pl.cdiv(m, tile_max))         # >= 2 tiles -> both v7x TCs get work
    return _round_up(pl.cdiv(m, n_tiles), 8)       # balanced, minimal M-padding waste


def highway_network(x, wh, bh, wt, bt):
    """x: (..., D). wh/wt: (D, D) in W^T layout (out = x @ W). bh/bt: (D,).

    Activation stream is bf16 (f32 accumulation / f32 activation math); output f32.
    """
    orig_shape = x.shape
    d = orig_shape[-1]
    x2 = x.reshape(-1, d).astype(jnp.bfloat16)     # bf16 activation stream in HBM
    m = x2.shape[0]

    d_pad = _round_up(d, 128)                      # pad only the small resident weight
    tile_m = _choose_tile_m(m)
    grid = (pl.cdiv(m, tile_m),)                   # partial last tile handled by Pallas

    # Fused, padded weight [Wh | Wt] (W^T layout) and bias; h/t split at column d_pad.
    w_cat = jnp.zeros((d, 2 * d_pad), jnp.float32)
    w_cat = w_cat.at[:, :d].set(wh.astype(jnp.float32))
    w_cat = w_cat.at[:, d_pad:d_pad + d].set(wt.astype(jnp.float32))
    w_cat = w_cat.astype(jnp.bfloat16)             # MXU operand dtype

    b_cat = jnp.zeros((1, 2 * d_pad), jnp.float32)
    b_cat = b_cat.at[0, :d].set(bh.astype(jnp.float32))
    b_cat = b_cat.at[0, d_pad:d_pad + d].set(bt.astype(jnp.float32))

    out = pl.pallas_call(
        highway_kernel,
        out_shape=jax.ShapeDtypeStruct((m, d), jnp.float32),
        grid=grid,
        in_specs=[
            pl.BlockSpec((tile_m, d), lambda i: (i, 0)),       # x tile (pipelined, bf16)
            pl.BlockSpec((d, 2 * d_pad), lambda i: (0, 0)),    # fused weights (resident)
            pl.BlockSpec((1, 2 * d_pad), lambda i: (0, 0)),    # fused bias (resident)
        ],
        out_specs=pl.BlockSpec((tile_m, d), lambda i: (i, 0)),
        compiler_params=pltpu.CompilerParams(
            dimension_semantics=("parallel",),
            vmem_limit_bytes=32 << 20,
        ),
    )(x2, w_cat, b_cat)

    return out.reshape(orig_shape).astype(x.dtype)


def highway_reference(x, wh, bh, wt, bt):
    h = x @ wh + bh
    t = jax.nn.sigmoid(x @ wt + bt)
    return t * jnp.maximum(h, 0.0) + (1.0 - t) * x


if __name__ == "__main__":
    # word_dim from CharCNN: sum(k * 16 for k in [2, 3, 4, 5]) = 224.
    # Highway input matches y.permute(0, 2, 1) in CharCNNRNN: (batch*seq, 1, word_dim).
    word_dim = 224
    batch, seq = 2, 8                               # -> M = 16 highway rows (2 tiles of 8)

    key = jax.random.PRNGKey(0)
    kx, kwh, kbh, kwt, kbt = jax.random.split(key, 5)

    # Deterministic PyTorch-style Linear init: U(-1/sqrt(in), 1/sqrt(in)).
    bound = 1.0 / (word_dim ** 0.5)
    x = jax.random.normal(kx, (batch * seq, 1, word_dim), dtype=jnp.float32)
    wh = jax.random.uniform(kwh, (word_dim, word_dim), jnp.float32, -bound, bound)  # W^T layout
    bh = jax.random.uniform(kbh, (word_dim,), jnp.float32, -bound, bound)
    wt = jax.random.uniform(kwt, (word_dim, word_dim), jnp.float32, -bound, bound)  # W^T layout
    bt = jax.random.uniform(kbt, (word_dim,), jnp.float32, -bound, bound)

    out = highway_network(x, wh, bh, wt, bt)
    out = jax.block_until_ready(out)

    ref = highway_reference(x, wh, bh, wt, bt)
    assert out.shape == x.shape
    # bf16 activation stream + bf16 MXU operands (f32 accumulation) -> relaxed tolerance.
    assert jnp.allclose(out, ref, atol=3e-2, rtol=3e-2), "mismatch vs reference"

    print("KERNEL_OK")
</pallas_src>

<mosaic_0001>
module attributes {stable_mosaic.version = 11 : i64} {
  func.func @highway_kernel(%arg0: i32, %arg1: memref<8x224xbf16, #tpu.memory_space<vmem>>, %arg2: memref<224x512xbf16, #tpu.memory_space<vmem>>, %arg3: memref<1x512xf32, #tpu.memory_space<vmem>>, %arg4: memref<8x224xf32, #tpu.memory_space<vmem>>) attributes {dimension_semantics = [#tpu.dimension_semantics<parallel>], iteration_bounds = array<i64: 2>, scalar_prefetch = 0 : i64, scratch_operands = 0 : i64, tpu.core_type = #tpu.core_type<tc>, window_params = [{transform_indices = @transform_0, window_bounds = array<i64: 8, 224>}, {pipeline_mode = #tpu.pipeline_mode<synchronous>, transform_indices = @transform_1, window_bounds = array<i64: 224, 512>}, {pipeline_mode = #tpu.pipeline_mode<synchronous>, transform_indices = @transform_2, window_bounds = array<i64: 1, 512>}, {transform_indices = @transform_3, window_bounds = array<i64: 8, 224>}]} {
    %c0 = arith.constant 0 : index
    %c0_0 = arith.constant 0 : index
    %0 = vector.load %arg1[%c0, %c0_0] : memref<8x224xbf16, #tpu.memory_space<vmem>>, vector<8x224xbf16>
    %c0_1 = arith.constant 0 : index
    %c0_2 = arith.constant 0 : index
    %1 = vector.load %arg2[%c0_1, %c0_2] : memref<224x512xbf16, #tpu.memory_space<vmem>>, vector<224x512xbf16>
    %cst = arith.constant dense<0.000000e+00> : vector<8x512xf32>
    %2 = tpu.matmul %0, %1, %cst {dimension_numbers = #tpu.dot_dimension_numbers<[1], [0], [0], [1], [0, 0, 1, 1], [], []>} : vector<8x224xbf16>, vector<224x512xbf16>, vector<8x512xf32> -> vector<8x512xf32>
    %c0_3 = arith.constant 0 : index
    %c0_4 = arith.constant 0 : index
    %3 = vector.load %arg3[%c0_3, %c0_4] : memref<1x512xf32, #tpu.memory_space<vmem>>, vector<1x512xf32>
    %4 = vector.broadcast %3 : vector<1x512xf32> to vector<8x512xf32>
    %5 = arith.addf %2, %4 : vector<8x512xf32>
    %6 = vector.extract_strided_slice %5 {offsets = [0, 0], sizes = [8, 224], strides = [1, 1]} : vector<8x512xf32> to vector<8x224xf32>
    %7 = vector.extract_strided_slice %5 {offsets = [0, 256], sizes = [8, 224], strides = [1, 1]} : vector<8x512xf32> to vector<8x224xf32>
    %8 = arith.negf %7 : vector<8x224xf32>
    %9 = math.exp %8 : vector<8x224xf32>
    %cst_5 = arith.constant 1.000000e+00 : f32
    %10 = vector.broadcast %cst_5 : f32 to vector<8x224xf32>
    %11 = arith.addf %10, %9 : vector<8x224xf32>
    %12 = arith.divf %10, %11 : vector<8x224xf32>
    %13 = arith.extf %0 : vector<8x224xbf16> to vector<8x224xf32>
    %cst_6 = arith.constant 0.000000e+00 : f32
    %14 = vector.broadcast %cst_6 : f32 to vector<8x224xf32>
    %15 = arith.maximumf %6, %14 : vector<8x224xf32>
    %16 = arith.subf %15, %13 : vector<8x224xf32>
    %17 = arith.mulf %12, %16 : vector<8x224xf32>
    %18 = arith.addf %13, %17 : vector<8x224xf32>
    %c0_7 = arith.constant 0 : index
    %c0_8 = arith.constant 0 : index
    %19 = vector.load %arg4[%c0_7, %c0_8] : memref<8x224xf32, #tpu.memory_space<vmem>>, vector<8x224xf32>
    tpu.vector_store %arg4[%c0_7, %c0_8], %18 {strides = array<i32>} : memref<8x224xf32, #tpu.memory_space<vmem>>, vector<8x224xf32>,
    return
  }
  func.func @transform_0(%arg0: i32) -> (i32, i32) {
    %c0_i32 = arith.constant 0 : i32
    %c0_i32_0 = arith.constant 0 : i32
    return %arg0, %c0_i32 : i32, i32
  }
  func.func @transform_1(%arg0: i32) -> (i32, i32) {
    %c0_i32 = arith.constant 0 : i32
    %c0_i32_0 = arith.constant 0 : i32
    %c0_i32_1 = arith.constant 0 : i32
    return %c0_i32, %c0_i32_0 : i32, i32
  }
  func.func @transform_2(%arg0: i32) -> (i32, i32) {
    %c0_i32 = arith.constant 0 : i32
    %c0_i32_0 = arith.constant 0 : i32
    %c0_i32_1 = arith.constant 0 : i32
    return %c0_i32, %c0_i32_0 : i32, i32
  }
  func.func @transform_3(%arg0: i32) -> (i32, i32) {
    %c0_i32 = arith.constant 0 : i32
    %c0_i32_0 = arith.constant 0 : i32
    return %arg0, %c0_i32 : i32, i32
  }
}

</mosaic_0001>

<bundles_post_ra>
// kernel: tpu_custom_call.1
= control target key start
LH: loop header
LB: loop body
LE: loop exit
PB: predicated region body
PF: predicated region fallthrough
CT: control target
= control target key end

     0   :  { %8 = vsyncpa [#allocation3], 0  ;;  %s1395_s0 = inlined_call_operand.hbm [shape: bf16[16,224], index: 0, kind: input, shape index: {}]   ;;  %s1396_s1 = inlined_call_operand.hbm [shape: bf16[224,512], index: 1, kind: input, shape index: {}]   ;;  %s1397_s2 = inlined_call_operand.hbm [shape: f32[1,512], index: 2, kind: input, shape index: {}]   ;;  %s1398_s3 = inlined_call_operand.hbm [shape: f32[16,224], index: 3, kind: output, shape index: {}]  }
   0x1   :  { %10 = vsyncpa [#allocation3 + $0x1], 0 }
   0x2   :  { %11 = vsyncpa [#allocation6], 0 }
   0x3   :  { %12 = vsyncpa [#allocation4], 0 }
   0x4   :  { %14 = vsyncpa [#allocation4 + $0x1], 0  ;;  %s1215_s12 = smov 0   ;;  %s1217_s13 = smov 0  }
   0x5   :  { %s1219_s14 = smov 0   ;;  %s1221_s15 = smov 0  }
   0x6 LB: > { %s1236_s16 = sadd.s32 4294967295, %s1187_s15   ;;  %s794_s17 = sadd.s32 4294967294, %s1187_s15   ;;  %s1187_s15 = sphi %s1221_s15, %s1420_s15   ;;  %s1183_s14 = sphi %s1219_s14, %s1419_s14   ;;  %s1179_s13 = sphi %s1217_s13, %s1418_s13   ;;  %s1175_s12 = sphi %s1215_s12, %s1417_s12  }
   0x7   : > { %p40_p0 = scmp.ne.s32.totalorder %s1179_s13, %s1175_s12  ;;  %p1399_p1 = scmp.eq.s32.totalorder %s1236_s16, 0 }
   0x8   : > { %p112_p3 = scmp.eq.s32.totalorder %s794_s17, 1  ;;  %p795_p5 = scmp.ge.s32.totalorder %s1187_s15, 1 }
   0x9   : > { %p1245_p4 = por %p1399_p1, %p40_p0  ;;  %p119_p7 = scmp.lt.s32.totalorder %s1187_s15, 3 }
   0xa   : > { %p1250_p6 = por %p112_p3, %p40_p0  ;;  %s1189_s21 = smov [#allocation5]  }
   0xb   : > { %s1403_s18 = scalar_select %p1245_p4, 1, 0 }
   0xc   : > { %s1404_s19 = scalar_select %p1250_p6, 1, 0 }
   0xd   : > { %p1255_p8 = pnand %p795_p5, %p119_p7  ;;  %s131_s22 = sshll.u32 %s1189_s21, 4  ;;  %s132_s22 = int_to_ptr.vmem [resolvable:$true] %s131_s22 }
   0xe   : > { %s1190_s24 = smov [#allocation7]   ;;  %s1050_s26 = scalar_lea.vmem %s132_s22, 7168 }
   0xf   : > { %s1405_s20 = scalar_select %p1255_p8, 1, 0 }
  0x10   : > { %p888_p9 = pneg %p1255_p8  ;;  %s145_s25 = sshll.u32 %s1190_s24, 4  ;;  %s146_s25 = int_to_ptr.vmem [resolvable:$true] %s145_s25 }
  0x11   : > { %p1051_p13 = scmp.ne.s32.totalorder %s132_s22, %s1050_s26  ;;  %p1058_p5 = scmp.lt.s32.totalorder %s132_s22, %s132_s22 }
  0x12   : > { %p1264_p11 = pnand %p888_p9, %p1399_p1  ;;  %p1059_p7 = scmp.lt.s32.totalorder %s1050_s26, %s1050_s26 }
  0x14   : > { %p1041_p12 = pneg %p1264_p11  ;;  %p1060_p10 = por %p1059_p7, %p1058_p5 }
  0x16   : > { %p1053_p0 = pnand %p1051_p13, %p1041_p12 }
  0x18   : > { %p1054_p3 = pneg %p1053_p0 }
  0x1a   : > { %p1061_p9 = pnand %p1060_p10, %p1054_p3 }
  0x1c   : > { %1064 = shalt.err (!%p1061_p9)
}
  0x1d   : > { %s1191_s27 = smov 256   ;;  %s1192_s28 = smov 16  }
  0x1e   : > { %891 = dma.hbm_to_vmem [thread:$0]  (!%p1264_p11), %s1396_s1, 7168, %s132_s22, [#allocation6], %s1191_s27, %s1191_s27, %s1192_s28  }
  0x1f   : > { %s1076_s4 = scalar_lea.vmem %s146_s25, 64  ;;  %p1084_p2 = scmp.lt.s32.totalorder %s146_s25, %s146_s25 }
  0x20   : > { %p1077_p1 = scmp.ne.s32.totalorder %s146_s25, %s1076_s4  ;;  %p1085_p6 = scmp.lt.s32.totalorder %s1076_s4, %s1076_s4 }
  0x22   : > { %p1079_p13 = pnand %p1077_p1, %p1041_p12  ;;  %p1086_p5 = por %p1085_p6, %p1084_p2 }
  0x24   : > { %p1080_p0 = pneg %p1079_p13 }
  0x26   : > { %p1087_p10 = pnand %p1086_p5, %p1080_p0 }
  0x28   : > { %1090 = shalt.err (!%p1087_p10)
}
  0x29   : > { %894 = dma.hbm_to_vmem [thread:$0]  (!%p1264_p11), %s1397_s2, 64, %s146_s25, [#allocation6]  }
  0x2a   : > { %s1287_s7 = sadd.s32 1, %s1187_s15   ;;  %s27_s8 = sadd.s32 1, %s1183_s14 }
  0x2b   : > { %s24_s9 = ssub.s32 %s1187_s15, %s1287_s7  ;;  %p34_p1 = scmp.ne.s32.totalorder %s1183_s14, %s1179_s13 }
  0x2c   : > { %p25_p2 = scmp.eq.s32.totalorder %s24_s9, 0  ;;  %p35_p6 = scmp.eq.s32.totalorder %s1187_s15, 0 }
  0x2d   : > { %p1407_p12 = scmp.eq.s32.totalorder %s1236_s16, 1  ;;  %p905_p7 = scmp.lt.s32.totalorder %s1187_s15, 2 }
  0x2e   : > { %s1303_s11 = scalar_select %p25_p2, %s1183_s14, %s27_s8  }
  0x2f   : > { %p1297_p3 = por %p1407_p12, %p34_p1  ;;  %p36_p9 = por %p35_p6, %p34_p1 }
  0x30   : > { %s156_s17 = sand.u32 1, %s1183_s14   ;;  %s874_s22 = sshll.u32 %s1187_s15, 7 }
  0x31   : > { %s1408_s10 = scalar_select %p1297_p3, 1, 0 }
  0x32   : > { %s799_s21 = sshll.u32 %s156_s17, 3  ;;  %s1310_s25 = scalar_lea.hbm %s1395_s0, %s874_s22 }
  0x33   : > { %s160_s26 = scalar_lea.vmem [#allocation2], %s799_s21  ;;  %p1312_p11 = pnand %p905_p7, %p36_p9 }
  0x34   : > { %s168_s27 = sshll.u32 %s160_s26, 4  ;;  %s157_s29 = scalar_lea.sflag [#allocation3], %s156_s17  ;;  %s169_s27 = int_to_ptr.vmem [resolvable:$true] %s168_s27 }
  0x35   : > { %s1091_s30 = scalar_lea.hbm %s1310_s25, 128  ;;  %p1093_p0 = pneg %p1312_p11 }
  0x36   : > { %p1092_p13 = scmp.ne.s32.totalorder %s1310_s25, %s1091_s30  ;;  %s1096_s6 = scalar_lea.hbm %s1395_s0, 256 }
  0x37   : > { %p1097_p1 = scmp.lt.s32.totalorder %s1310_s25, %s1395_s0  ;;  %p1098_p2 = scmp.lt.s32.totalorder %s1096_s6, %s1091_s30 }
  0x38   : > { %p1094_p5 = pnand %p1093_p0, %p1092_p13 }
  0x39   : > { %p1099_p6 = por %p1098_p2, %p1097_p1 }
  0x3a   : > { %p1095_p10 = pneg %p1094_p5 }
  0x3c   : > { %p1100_p12 = pnand %p1099_p6, %p1095_p10 }
  0x3e   : > { %1103 = shalt.err (!%p1100_p12)
}
  0x3f   : > { %s1104_s21 = scalar_lea.vmem %s169_s27, 128  ;;  %s1193_s17 = smov [#allocation2]  }
  0x40   : > { %p1105_p7 = scmp.ne.s32.totalorder %s169_s27, %s1104_s21  ;;  %s1109_s22 = sshll.u32 %s1193_s17, 4  ;;  %s1110_s22 = int_to_ptr.vmem [resolvable:$false] %s1109_s22 }
  0x41   : > { %s1111_s23 = scalar_lea.vmem %s1110_s22, 256  ;;  %p1112_p13 = scmp.lt.s32.totalorder %s169_s27, %s1110_s22 }
  0x42   : > { %p1107_p9 = pnand %p1105_p7, %p1093_p0  ;;  %p1113_p5 = scmp.lt.s32.totalorder %s1111_s23, %s1104_s21 }
  0x44   : > { %p1108_p3 = pneg %p1107_p9  ;;  %p1114_p4 = por %p1113_p5, %p1112_p13 }
  0x46   : > { %p1115_p8 = pnand %p1114_p4, %p1108_p3 }
  0x48   : > { %1118 = shalt.err (!%p1115_p8)
}
  0x49   : > { %898 = dma.hbm_to_vmem [thread:$0]  (!%p1312_p11), %s1310_s25, 128, %s169_s27, %s157_s29  }
  0x4a   : > { %p1410_p10 = scmp.ne.s32.totalorder %s1405_s20, 0 }
  0x4b   : > { %s1333_s24 = sand.u32 (!%p1410_p10), 1, %s1179_s13   ;;  %p1411_p0 = scmp.ne.s32.totalorder (!%p1410_p10), %s1403_s18, 0 }
  0x4c   : > { %177 = sbr.rel (%p1410_p10) target bundleno = 388 (0x184), region = 32  ;;  %s803_s26 = sshll.u32 (!%p1410_p10), %s1333_s24, 3 }
  0x4d   : > { %s180_s30 = scalar_lea.sflag (!%p1410_p10), [#allocation3], %s1333_s24  ;;  %s1337_s4 = scalar_lea.vmem (!%p1410_p10), [#allocation2], %s803_s26 }
  0x51   : > { %1162 = dma.done.wait (%p1411_p0), %s180_s30, 128  }
  0x52   : > { %1164 = vsyncadd (%p1411_p0), %s180_s30, 4294967168  ;;  %p1412_p4 = scmp.eq.s32.totalorder %s1236_s16, 0 }
  0x54   : > { %1166 = dma.done.wait (%p1412_p4), [#allocation6], 7232   ;;  %p1413_p8 = pmov %p1412_p4 }
  0x55   : > { %v945_v0 = vld [vmem:[#allocation5 + $0xec] ss:$16 sps:$4 sm:$0xff]   ;;  %v947_v1 = vld [vmem:[#allocation5 + $0xe8] ss:$16 sps:$4 sm:$0xff]   ;;  %v963_v7 = vld [vmem:[#allocation5 + $0xe4] ss:$16 sps:$4 sm:$0xff]   ;;  %v274_v59 = vlaneseq }
  0x56   : > { %1168 = vsyncadd (%p1413_p8), [#allocation6], 4294960064  ;;  %625 = vmatprep.subr.bf16.mxu1 %v945_v0  ;;  %v948_v2 = vld [vmem:[#allocation5 + $0xcc] ss:$16 sps:$4 sm:$0xff]   ;;  %v950_v3 = vld [vmem:[#allocation5 + $0xc8] ss:$16 sps:$4 sm:$0xff]   ;;  %584 = vmatprep.subr.bf16.mxu0 %v963_v7 }
  0x57   : > { %626 = vmatpush1.bf16.msra.mxu1 %v947_v1  ;;  %v951_v4 = vld [vmem:[#allocation5 + $0xac] ss:$16 sps:$4 sm:$0xff]   ;;  %v953_v5 = vld [vmem:[#allocation5 + $0xa8] ss:$16 sps:$4 sm:$0xff]   ;;  %v965_v8 = vld [vmem:[#allocation5 + $0xe0] ss:$16 sps:$4 sm:$0xff]  }
  0x58   : > { %627 = vmatprep.subr.bf16.mxu1 %v948_v2  ;;  %v954_v6 = vld [vmem:[#allocation5 + $0x8c] ss:$16 sps:$4 sm:$0xff]   ;;  %v956_v9 = vld [vmem:[#allocation5 + $0x88] ss:$16 sps:$4 sm:$0xff]   ;;  %585 = vmatpush1.bf16.msra.mxu0 %v965_v8  ;;  %v969_v10 = vld [vmem:[#allocation5 + $0xc4] ss:$16 sps:$4 sm:$0xff]  }
  0x59   : > { %v971_v11 = vld [vmem:[#allocation5 + $0xc0] ss:$16 sps:$4 sm:$0xff]   ;;  %v957_v12 = vld [vmem:[#allocation5 + $0x6c] ss:$16 sps:$4 sm:$0xff]   ;;  %586 = vmatprep.subr.bf16.mxu0 %v969_v10  ;;  %v959_v13 = vld [vmem:[#allocation5 + $0x68] ss:$16 sps:$4 sm:$0xff]  }
  0x5a   : > { %v975_v14 = vld [vmem:[#allocation5 + $0xa4] ss:$16 sps:$4 sm:$0xff]   ;;  %v960_v15 = vld [vmem:[#allocation5 + $0x4c] ss:$16 sps:$4 sm:$0xff]   ;;  %v977_v16 = vld [vmem:[#allocation5 + $0xa0] ss:$16 sps:$4 sm:$0xff]  }
  0x5b   : > { %628 = vmatpush1.bf16.msra.mxu1 %v950_v3  ;;  %v981_v17 = vld [vmem:[#allocation5 + $0x84] ss:$16 sps:$4 sm:$0xff]   ;;  %v962_v18 = vld [vmem:[#allocation5 + $0x48] ss:$16 sps:$4 sm:$0xff]   ;;  %v966_v19 = vld [vmem:[#allocation5 + $0x2c] ss:$16 sps:$4 sm:$0xff]  }
  0x5c   : > { %629 = vmatprep.subr.bf16.mxu1 %v951_v4  ;;  %587 = vmatpush1.bf16.msra.mxu0 %v971_v11  ;;  %v983_v20 = vld [vmem:[#allocation5 + $0x80] ss:$16 sps:$4 sm:$0xff]   ;;  %v987_v21 = vld [vmem:[#allocation5 + $0x64] ss:$16 sps:$4 sm:$0xff]   ;;  %v968_v22 = vld [vmem:[#allocation5 + $0x28] ss:$16 sps:$4 sm:$0xff]  }
  0x5d   : > { %588 = vmatprep.subr.bf16.mxu0 %v975_v14  ;;  %v972_v23 = vld [vmem:[#allocation5 + $0xc] ss:$16 sps:$4 sm:$0xff]   ;;  %v989_v24 = vld [vmem:[#allocation5 + $0x60] ss:$16 sps:$4 sm:$0xff]   ;;  %v993_v25 = vld [vmem:[#allocation5 + $0x44] ss:$16 sps:$4 sm:$0xff]  }
  0x5e   : > { %v974_v26 = vld [vmem:[#allocation5 + $0x8] ss:$16 sps:$4 sm:$0xff]   ;;  %v978_v27 = vld [vmem:[#allocation5 + $0x1ac] ss:$16 sps:$4 sm:$0xff]   ;;  %v995_v28 = vld [vmem:[#allocation5 + $0x40] ss:$16 sps:$4 sm:$0xff]  }
  0x5f   : > { %630 = vmatpush1.bf16.msra.mxu1 %v953_v5  ;;  %v999_v29 = vld [vmem:[#allocation5 + $0x24] ss:$16 sps:$4 sm:$0xff]   ;;  %v980_v30 = vld [vmem:[#allocation5 + $0x1a8] ss:$16 sps:$4 sm:$0xff]   ;;  %v984_v31 = vld [vmem:[#allocation5 + $0x18c] ss:$16 sps:$4 sm:$0xff]  }
  0x60   : > { %631 = vmatprep.subr.bf16.mxu1 %v954_v6  ;;  %589 = vmatpush1.bf16.msra.mxu0 %v977_v16  ;;  %v1348_v32 = vld [vmem:[%s1337_s4] sm:$0xff]  ;;  %vm580_vm0 = vcmask 785408   ;;  %v275_v60 = vshrl.u32 %v274_v59, 7  ;;  %v272_v62 = vld [vmem:[#allocation7] sm:$0xf]  ;;  %s806_s18 = sshll.u32 %s1333_s24, 4 }
  0x61   : > { %590 = vmatprep.subr.bf16.mxu0 %v981_v17  ;;  %v1001_v33 = vld [vmem:[#allocation5 + $0x20] ss:$16 sps:$4 sm:$0xff]   ;;  %v808_v34 = vcombine.high %v1348_v32, %v1348_v32  ;;  %v1005_v35 = vld [vmem:[#allocation5 + $0x4] ss:$16 sps:$4 sm:$0xff]   ;;  %v986_v36 = vld [vmem:[#allocation5 + $0x188] ss:$16 sps:$4 sm:$0xff]   ;;  %v807_v55 = vcombine.low %v1348_v32, %v1348_v32 }
  0x62   : > { %v990_v37 = vld [vmem:[#allocation5 + $0x16c] ss:$16 sps:$4 sm:$0xff]   ;;  %v1007_v38 = vld [vmem:[#allocation5] ss:$16 sps:$4 sm:$0xff]   ;;  %v1011_v39 = vld [vmem:[#allocation5 + $0x1a4] ss:$16 sps:$4 sm:$0xff]  }
  0x63   : > { %632 = vmatpush1.bf16.msra.mxu1 %v956_v9  ;;  %866 = vmatprep.mubr.msk.bf16.mxu1 %vm580_vm0, %v808_v34  ;;  %v992_v40 = vld [vmem:[#allocation5 + $0x168] ss:$16 sps:$4 sm:$0xff]   ;;  %v1013_v41 = vld [vmem:[#allocation5 + $0x1a0] ss:$16 sps:$4 sm:$0xff]   ;;  %v996_v42 = vld [vmem:[#allocation5 + $0x14c] ss:$16 sps:$4 sm:$0xff]  }
  0x64   : > { %633 = vmatprep.subr.bf16.mxu1 %v957_v12  ;;  %591 = vmatpush1.bf16.msra.mxu0 %v983_v20  ;;  %v1016_v43 = vld [vmem:[#allocation5 + $0x184] ss:$16 sps:$4 sm:$0xff]   ;;  %v998_v44 = vld [vmem:[#allocation5 + $0x148] ss:$16 sps:$4 sm:$0xff]   ;;  %v1018_v45 = vld [vmem:[#allocation5 + $0x180] ss:$16 sps:$4 sm:$0xff]  }
  0x65   : > { %592 = vmatprep.subr.bf16.mxu0 %v987_v21  ;;  %865 = vmatprep.mubr.msk.bf16.mxu0 %vm580_vm0, %v808_v34  ;;  %v1002_v46 = vld [vmem:[#allocation5 + $0x12c] ss:$16 sps:$4 sm:$0xff]   ;;  %v1019_v47 = vld [vmem:[#allocation5 + $0x164] ss:$16 sps:$4 sm:$0xff]   ;;  %v1004_v48 = vld [vmem:[#allocation5 + $0x128] ss:$16 sps:$4 sm:$0xff]  }
  0x66   : > { %v1021_v49 = vld [vmem:[#allocation5 + $0x160] ss:$16 sps:$4 sm:$0xff]   ;;  %v1008_v50 = vld [vmem:[#allocation5 + $0x10c] ss:$16 sps:$4 sm:$0xff]   ;;  %v1022_v51 = vld [vmem:[#allocation5 + $0x144] ss:$16 sps:$4 sm:$0xff]  }
  0x67   : > { %634 = vmatpush1.bf16.msra.mxu1 %v959_v13  ;;  %v1010_v52 = vld [vmem:[#allocation5 + $0x108] ss:$16 sps:$4 sm:$0xff]   ;;  %v1024_v53 = vld [vmem:[#allocation5 + $0x140] ss:$16 sps:$4 sm:$0xff]   ;;  %v1025_v54 = vld [vmem:[#allocation5 + $0x124] ss:$16 sps:$4 sm:$0xff]  }
  0x68   : > { %635 = vmatprep.subr.bf16.mxu1 %v960_v15  ;;  %593 = vmatpush1.bf16.msra.mxu0 %v989_v24  ;;  %v1027_v56 = vld [vmem:[#allocation5 + $0x120] ss:$16 sps:$4 sm:$0xff]   ;;  %v1028_v57 = vld [vmem:[#allocation5 + $0x104] ss:$16 sps:$4 sm:$0xff]   ;;  %v284_v61 = vsub.s32 2, %v275_v60  ;;  %v288_v63 = vsub.s32 3, %v275_v60 }
  0x69   : > { %594 = vmatprep.subr.bf16.mxu0 %v993_v25  ;;  %v1030_v58 = vld [vmem:[#allocation5 + $0x100] ss:$16 sps:$4 sm:$0xff]   ;;  %v276_v14 = vsub.s32 0, %v275_v60  ;;  %s875_s20 = sshll.u32 %s1236_s16, 8  ;;  %s213_s25 = scalar_lea.vmem [#allocation8], %s806_s18 }
  0x6a   : > { %v285_v0 = vrot.slane %v272_v62, %v284_v61  ;;  %v289_v1 = vrot.slane %v272_v62, %v288_v63  ;;  %s705_s27 = sshll.u32 %s213_s25, 4  ;;  %s703_s5 = scalar_lea.hbm %s1398_s3, %s875_s20  ;;  %s706_s27 = int_to_ptr.vmem [resolvable:$true] %s705_s27 }
  0x6b   : > { %636 = vmatpush1.bf16.msra.mxu1 %v962_v18  ;;  %v277_v17 = vrot.slane %v272_v62, %v276_v14  ;;  %v280_v18 = vsub.s32 1, %v275_v60  ;;  %s691_s6 = scalar_lea.sflag [#allocation4], %s1333_s24  ;;  %s1119_s8 = scalar_lea.vmem %s706_s27, 256 }
  0x6c   : > { %637 = vmatprep.subr.bf16.mxu1 %v966_v19  ;;  %595 = vmatpush1.bf16.msra.mxu0 %v995_v28  ;;  %p1120_p3 = scmp.ne.s32.totalorder %s706_s27, %s1119_s8  ;;  %p1414_p11 = scmp.ne.s32.totalorder %s1408_s10, 0 }
  0x6d   : > { %596 = vmatprep.subr.bf16.mxu0 %v999_v29  ;;  %s1194_s16 = smov [#allocation8]  }
  0x6e   : > { %p1121_p1 = pnand %p1120_p3, %p1414_p11  ;;  %s1123_s9 = sshll.u32 %s1194_s16, 4  ;;  %s1124_s9 = int_to_ptr.vmem [resolvable:$false] %s1123_s9 }
  0x6f   : > { %638 = vmatpush1.bf16.msra.mxu1 %v968_v22  ;;  %v281_v22 = vrot.slane %v272_v62, %v280_v18  ;;  %s1125_s21 = scalar_lea.vmem %s1124_s9, 512  ;;  %p1126_p6 = scmp.lt.s32.totalorder %s706_s27, %s1124_s9 }
  0x70   : > { %639 = vmatprep.subr.bf16.mxu1 %v972_v23  ;;  %597 = vmatpush1.bf16.msra.mxu0 %v1001_v33  ;;  %v678_v23 = vunpack.c.l.bf16 %v1348_v32  ;;  %p1122_p2 = pneg %p1121_p1  ;;  %p1127_p12 = scmp.lt.s32.totalorder %s1125_s21, %s1119_s8 }
  0x71   : > { %598 = vmatprep.subr.bf16.mxu0 %v1005_v35 }
  0x72   : > { %p1128_p7 = por %p1127_p12, %p1126_p6 }
  0x73   : > { %640 = vmatpush1.bf16.msra.mxu1 %v974_v26 }
  0x74   : > { %645 = vmatprep.subr.bf16.mxu1 %v978_v27  ;;  %599 = vmatpush1.bf16.msra.mxu0 %v1007_v38  ;;  %v679_v27 = vunpack.c.h.bf16 %v1348_v32  ;;  %p1129_p9 = pnand %p1128_p7, %p1122_p2 }
  0x75   : > { %604 = vmatprep.subr.bf16.mxu0 %v1011_v39 }
  0x77   : > { %646 = vmatpush2.bf16.msra.mxu1 %v980_v30 }
  0x78   : > { %647 = vmatprep.subr.bf16.mxu1 %v984_v31  ;;  %605 = vmatpush2.bf16.msra.mxu0 %v1013_v41 }
  0x79   : > { %606 = vmatprep.subr.bf16.mxu0 %v1016_v43 }
  0x7b   : > { %648 = vmatpush2.bf16.msra.mxu1 %v986_v36 }
  0x7c   : > { %649 = vmatprep.subr.bf16.mxu1 %v990_v37  ;;  %607 = vmatpush2.bf16.msra.mxu0 %v1018_v45 }
  0x7d   : > { %608 = vmatprep.subr.bf16.mxu0 %v1019_v47 }
  0x7f   : > { %650 = vmatpush2.bf16.msra.mxu1 %v992_v40 }
  0x80   : > { %651 = vmatprep.subr.bf16.mxu1 %v996_v42  ;;  %609 = vmatpush2.bf16.msra.mxu0 %v1021_v49 }
  0x81   : > { %610 = vmatprep.subr.bf16.mxu0 %v1022_v51 }
  0x83   : > { %652 = vmatpush2.bf16.msra.mxu1 %v998_v44 }
  0x84   : > { %653 = vmatprep.subr.bf16.mxu1 %v1002_v46  ;;  %611 = vmatpush2.bf16.msra.mxu0 %v1024_v53 }
  0x85   : > { %612 = vmatprep.subr.bf16.mxu0 %v1025_v54 }
  0x87   : > { %654 = vmatpush2.bf16.msra.mxu1 %v1004_v48 }
  0x88   : > { %655 = vmatprep.subr.bf16.mxu1 %v1008_v50  ;;  %613 = vmatpush2.bf16.msra.mxu0 %v1027_v56 }
  0x89   : > { %614 = vmatprep.subr.bf16.mxu0 %v1028_v57 }
  0x8b   : > { %656 = vmatpush2.bf16.msra.mxu1 %v1010_v52 }
  0x8c   : > { %615 = vmatpush2.bf16.msra.mxu0 %v1030_v58 }
  0x8e   : > { %658 = vmatmul.mubr.bf16.vlgmr.msra.gmra.mxu1 %v807_v55 }
  0x8f   : > { %617 = vmatmul.mubr.bf16.vlgmr.msra.gmra.mxu0 %v807_v55 }
 0x14e   : > { %v659_v2 = vpop.f32.mrf.mxu1 }
 0x14f   : > { %v660_v3 = vadd.f32 %v659_v2, %v285_v0  ;;  %v618_v10 = vpop.f32.mrf.mxu0 }
 0x150   : > { %v661_v4 = vpop.f32.mrf.mxu1  ;;  %v619_v21 = vadd.f32 %v618_v10, %v277_v17 }
 0x151   : > { %v867_v5 = vmul.f32 -1.442695, %v660_v3  ;;  %v662_v6 = vadd.f32 %v661_v4, %v289_v1  ;;  %v620_v11 = vpop.f32.mrf.mxu0 }
 0x152   : > { %v663_v7 = vpop.f32.mrf.mxu1  ;;  %v680_v24 = vmax.f32 %v619_v21, 0.0  ;;  %v621_v25 = vadd.f32 %v620_v11, %v281_v22 }
 0x153   : > { %1031 = vpow2.f32 %v867_v5  ;;  %v868_v8 = vmul.f32 -1.442695, %v662_v6  ;;  %v622_v12 = vpop.f32.mrf.mxu0 }
 0x154   : > { %v664_v9 = vpop.f32.mrf.mxu1  ;;  %v682_v26 = vsub.f32 %v680_v24, %v678_v23  ;;  %v681_v28 = vmax.f32 %v621_v25, 0.0 }
 0x155   : > { %1033 = vpow2.f32 %v868_v8  ;;  %v623_v13 = vpop.f32.mrf.mxu0 }
 0x156   : > { %v683_v31 = vsub.f32 %v681_v28, %v679_v27 }
 0x160   : > { %v1032_v15 = vpop.eup %1031 }
 0x161   : > { %v672_v16 = vadd.f32 1.0, %v1032_v15 }
 0x162   : > { %v1034_v19 = vpop.eup %1033 }
 0x163   : > { %1035 = vrcp.f32 %v672_v16  ;;  %v673_v20 = vadd.f32 1.0, %v1034_v19 }
 0x165   : > { %1037 = vrcp.f32 %v673_v20 }
 0x170   : > { %v1036_v29 = vpop.eup %1035 }
 0x171   : > { %v684_v30 = vmul.f32 %v1036_v29, %v682_v26 }
 0x172   : > { %v1038_v33 = vpop.eup %1037 }
 0x173   : > { %v686_v34 = vadd.f32 %v684_v30, %v678_v23  ;;  %v685_v35 = vmul.f32 %v1038_v33, %v683_v31 }
 0x175   : > { %v687_v36 = vadd.f32 %v685_v35, %v679_v27  ;;  %688 = vst [vmem:[%s213_s25] sm:$0xff] %v686_v34 }
 0x177   : > { %689 = vst.msk [vmem:[%s213_s25 + $0x8] sm:$0xff] %vm580_vm0, %v687_v36 }
 0x178   : > { %1132 = shalt.err (!%p1129_p9)
}
 0x179   : > { %s1133_s17 = scalar_lea.hbm %s703_s5, 256  ;;  %s1137_s24 = scalar_lea.hbm %s1398_s3, 512 }
 0x17a   : > { %p1134_p13 = scmp.ne.s32.totalorder %s703_s5, %s1133_s17  ;;  %p1138_p0 = scmp.lt.s32.totalorder %s703_s5, %s1398_s3 }
 0x17b   : > { %p1139_p4 = scmp.lt.s32.totalorder %s1137_s24, %s1133_s17 }
 0x17c   : > { %p1135_p5 = pnand %p1134_p13, %p1414_p11 }
 0x17d   : > { %p1140_p8 = por %p1139_p4, %p1138_p0 }
 0x17e   : > { %p1136_p10 = pneg %p1135_p5 }
 0x180   : > { %p1141_p3 = pnand %p1140_p8, %p1136_p10 }
 0x182   : > { %1144 = shalt.err (!%p1141_p3)
}
 0x183   : > { %886 = dma.vmem_to_hbm [thread:$0]  (%p1414_p11), %s706_s27, 256, %s703_s5, %s691_s6  }
 0x184 PF: > { %s717_s4 = sand.u32 1, %s1175_s12   ;;  %p1415_p1 = scmp.ne.s32.totalorder %s1404_s19, 0 }
 0x185   : > { %p1416_p2 = scmp.ge.s32.totalorder %s1187_s15, 2  ;;  %s718_s18 = scalar_lea.sflag [#allocation4], %s717_s4 }
 0x187   : > { %p900_p6 = pnand %p1416_p2, %p1415_p1 }
 0x189   : > { %p901_p12 = pneg %p900_p6 }
 0x18b   : > { %1170 = dma.done.wait (%p901_p12), %s718_s18, 256  }
 0x18c   : > { %1172 = vsyncadd (%p901_p12), %s718_s18, 4294967040  ;;  %p17_p7 = scmp.ge.s32.totalorder %s1287_s7, 4   ;;  %s1417_s12 = smov %s1179_s13 }
 0x18d   : > { %s1418_s13 = smov %s1183_s14  ;;  %s1419_s14 = smov %s1303_s11 }
 0x18e   : > { %s1420_s15 = smov %s1287_s7  ;;  %19 = sbr.rel (!%p17_p7) target bundleno = 6 (0x6), region = 85 }
 0x193   :  { %723 = vsyncpa [#allocation3], 1 }
 0x194   :  { %725 = vsyncpa [#allocation3 + $0x1], 1 }
 0x195   :  { %726 = vsyncpa [#allocation6], 1 }
 0x196   :  { %727 = vsyncpa [#allocation4], 1 }
 0x197   :  { %729 = vsyncpa [#allocation4 + $0x1], 1 }

</bundles_post_ra>
